<compile_context>
chip_gen: v5e
topology: v5e:2x2
jax: 0.10.0
libtpu: 0.0.40
codegen_flags: <defaults>
</compile_context>

<pallas_src>
import functools

import jax
import jax.numpy as jnp
from jax import lax
from jax.experimental import pallas as pl
from jax.experimental.pallas import tpu as pltpu


N_HIDDEN_UNITS = 10  # "N" in the PyTorch module


def _round_up(x, m):
    return ((x + m - 1) // m) * m


def _cdiv(a, b):
    return (a + b - 1) // b


def _vmem_capacity_bytes(default=64 * 1024 * 1024):
    """Physical VMEM of the local TPU; conservative 64 MiB (v7x) fallback."""
    try:
        info = pltpu.get_tpu_info()
        cap = getattr(info, "vmem_capacity_bytes", None)
        if cap:
            return int(cap)
    except Exception:
        pass
    return default


def _make_kernel(activation):
    """3-layer MLP + sigmoid for one batch tile, computed in transposed layout."""

    def kernel(x_ref, w1_ref, b1_ref, w2_ref, b2_ref, w3_ref, b3_ref, o_ref):
        x = x_ref[...]          # (bt, H)  batch tile, original orientation
        w1 = w1_ref[...]        # (N, H)   torch (out, in) layout

        # Layer 1: z1 = W1 @ xᵀ (contract H of both operands) -> (N, bt).
        # The large batch dim lands on the MXU N axis and the vreg lane axis.
        z1 = lax.dot_general(w1, x, (((1,), (1,)), ((), ())),
                             preferred_element_type=jnp.float32)
        h1 = activation(z1 + b1_ref[...])                    # bias (N, 1)

        # Layer 2: (N, N) @ (N, bt) -> (N, bt)
        z2 = jnp.dot(w2_ref[...], h1, preferred_element_type=jnp.float32)
        h2 = activation(z2 + b2_ref[...])

        # Layer 3: (1, N) @ (N, bt) -> (1, bt), then sigmoid. Lane-dense store.
        z3 = jnp.dot(w3_ref[...], h2, preferred_element_type=jnp.float32)
        o_ref[...] = jax.nn.sigmoid(z3 + b3_ref[...]).astype(o_ref.dtype)

    return kernel


def _x_block_spec(bt, H, n_buf):
    """x tile spec; optionally request deeper pipelining (pl.Buffered)."""
    if n_buf > 2 and hasattr(pl, "Buffered"):
        try:
            return pl.BlockSpec((bt, H), lambda i: (i, 0),
                                pipeline_mode=pl.Buffered(n_buf))
        except TypeError:   # older BlockSpec signature — fall back to default.
            pass
    return pl.BlockSpec((bt, H), lambda i: (i, 0))


def discriminator_forward(ts_batch, params, *, batch_tile=None,
                          compute_dtype=None, activation=jnp.tanh,
                          x_buffers=2):
    """Run the discriminator MLP with a Pallas TPU kernel.

    ts_batch:   (B, hidden_size).  If it is already bf16 (producer emits bf16),
                w1 is cast to match and the dominant HBM read is halved.
    params:     torch-layout dict: w1 (N,H), b1 (N,), w2 (N,N), b2 (N,),
                w3 (1,N), b3 (1,).
    batch_tile: rows per grid step.  Default None => largest VMEM-budgeted tile
                (capped so the grid keeps >=2 steps when B >= 256, letting v7x
                use both TensorCores).
    compute_dtype: force a dtype for x and w1 (e.g. jnp.bfloat16).  Note a
                wrapper-side cast adds an extra HBM pass over x; prefer giving
                ts_batch already in the target dtype.
    activation: elementwise jnp callable (default tanh) — mirrors the torch
                ctor's `activation` argument.
    x_buffers:  pipeline depth for the x input (2 = double buffering; 3 uses
                pl.Buffered(3) — sweep on hardware, revert if no gain).
    returns:    (B, 1) float32 in [0, 1].
    """
    B, H = ts_batch.shape
    w1, b1 = params["w1"], params["b1"]
    w2, b2 = params["w2"], params["b2"]
    w3, b3 = params["w3"], params["b3"]
    N = w1.shape[0]
    assert w1.shape == (N, H) and w2.shape == (N, N) and w3.shape == (1, N)

    x = ts_batch
    if compute_dtype is not None and x.dtype != compute_dtype:
        x = x.astype(compute_dtype)      # explicit opt-in: extra HBM pass over x
    w1c = w1.astype(x.dtype)             # match x so the MXU sees one dtype (tiny cast)

    # Biases / small weights reshaped for lane-axis broadcast, f32 accumulation.
    b1c = b1.reshape(N, 1).astype(jnp.float32)
    b2c = b2.reshape(N, 1).astype(jnp.float32)
    b3c = b3.reshape(1, 1).astype(jnp.float32)
    w2c = w2.astype(jnp.float32)
    w3c = w3.astype(jnp.float32)

    # ---- Tile selection -----------------------------------------------------
    itemsize = jnp.dtype(x.dtype).itemsize
    n_buf = max(2, int(x_buffers))
    vmem_cap = _vmem_capacity_bytes()
    # Generation-aware budget for the pipelined x buffers:
    #   v5e/v6e (128 MiB physical) -> 24 MiB, v7x (64 MiB) -> 16 MiB.
    x_budget = min(24 * 1024 * 1024, vmem_cap // 4)
    max_bt = max(128, ((x_budget // (n_buf * H * itemsize)) // 128) * 128)

    if batch_tile is None:
        bt = max_bt
    else:
        bt = max(128, (int(batch_tile) // 128) * 128)
        bt = min(bt, max_bt)
    bt = min(bt, _round_up(B, 128))            # never bigger than the batch
    if B >= 256:
        # Keep >=2 grid steps so v7x can shard across both TensorCores
        # (costs at most one extra ~0.35 us step on single-TC chips).
        bt = min(bt, max(128, _round_up(_cdiv(B, 2), 128)))
    bt = max(128, (bt // 128) * 128)

    grid = (_cdiv(B, bt),)

    # Explicit VMEM limit so the scoped default never clips the chosen tile.
    param_bytes = (w1c.size * itemsize +
                   (b1c.size + w2c.size + b2c.size + w3c.size + b3c.size) * 4)
    usage = n_buf * bt * H * itemsize + 2 * bt * 4 + 2 * param_bytes
    vmem_limit = int(min(0.9 * vmem_cap, max(32 * 1024 * 1024, 2 * usage)))

    # Parameters are tiny; each grid step sees the full tensors (block == full
    # array, constant index_map -> loaded once, no (8,128) requirement).
    def full2d(r, c):
        return pl.BlockSpec((r, c), lambda i: (0, 0))

    kernel = _make_kernel(activation)

    out_t = pl.pallas_call(
        kernel,
        out_shape=jax.ShapeDtypeStruct((1, B), jnp.float32),
        grid_spec=pltpu.PrefetchScalarGridSpec(
            num_scalar_prefetch=0,
            grid=grid,
            in_specs=[
                _x_block_spec(bt, H, n_buf),              # x tile (pipelined)
                full2d(N, H),                             # w1
                full2d(N, 1),                             # b1
                full2d(N, N),                             # w2
                full2d(N, 1),                             # b2
                full2d(1, N),                             # w3
                full2d(1, 1),                             # b3
            ],
            # Transposed, lane-dense output: (1, bt) tile at lane offset i*bt.
            # Boundary tile writes past B are masked by the pipeline.
            out_specs=pl.BlockSpec((1, bt), lambda i: (0, i)),
        ),
        compiler_params=pltpu.CompilerParams(
            dimension_semantics=("parallel",),
            vmem_limit_bytes=vmem_limit,
        ),
    )(x, w1c, b1c, w2c, b2c, w3c, b3c)

    # (1, B) lane-dense kernel output -> (B, 1) like the PyTorch module.
    return out_t[0].reshape(B, 1)


def init_discriminator_params(key, hidden_size, n=N_HIDDEN_UNITS):
    """Torch-layout params, init mimicking nn.Linear default U(-1/sqrt(fan_in), +)."""
    k1, k2, k3, k4, k5, k6 = jax.random.split(key, 6)

    def _uniform(k, shape, fan_in):
        bound = 1.0 / jnp.sqrt(jnp.float32(fan_in))
        return jax.random.uniform(k, shape, jnp.float32, -bound, bound)

    return {
        "w1": _uniform(k1, (n, hidden_size), hidden_size),   # (out, in)
        "b1": _uniform(k2, (n,), hidden_size),
        "w2": _uniform(k3, (n, n), n),
        "b2": _uniform(k4, (n,), n),
        "w3": _uniform(k5, (1, n), n),
        "b3": _uniform(k6, (1,), n),
    }


def _reference_forward(ts_batch, params, activation=jnp.tanh):
    """Pure-JAX reference (same math as torch's x @ W.T + b chain)."""
    h1 = activation(ts_batch @ params["w1"].T + params["b1"])
    h2 = activation(h1 @ params["w2"].T + params["b2"])
    return jax.nn.sigmoid(h2 @ params["w3"].T + params["b3"])


if __name__ == "__main__":
    key = jax.random.PRNGKey(0)
    k_param, k_data, k_data2 = jax.random.split(key, 3)

    hidden_size = 32
    params = init_discriminator_params(k_param, hidden_size)

    # Small test consistent with the module (batch=8, hidden=32): single step,
    # ragged (masked) boundary tile.
    batch = 8
    ts_batch = jax.random.normal(k_data, (batch, hidden_size), jnp.float32)
    out = jax.block_until_ready(discriminator_forward(ts_batch, params))
    ref = _reference_forward(ts_batch, params)
    assert out.shape == (batch, 1)
    assert jnp.allclose(out, ref, atol=1e-5, rtol=1e-5), "Pallas output mismatch"

    # Ragged batch, default (large-tile, >=2 grid steps) path — no jnp.pad.
    batch2 = 300
    ts_batch2 = jax.random.normal(k_data2, (batch2, hidden_size), jnp.float32)
    ref2 = _reference_forward(ts_batch2, params)

    out2 = jax.block_until_ready(discriminator_forward(ts_batch2, params))
    assert out2.shape == (batch2, 1)
    assert jnp.allclose(out2, ref2, atol=1e-5, rtol=1e-5), "Pallas output mismatch"

    # Explicit small tile: multi-step pipelined grid + boundary tile.
    out3 = jax.block_until_ready(
        discriminator_forward(ts_batch2, params, batch_tile=128))
    assert out3.shape == (batch2, 1)
    assert jnp.allclose(out3, ref2, atol=1e-5, rtol=1e-5), "Pallas output mismatch"

    # bf16 fast path: producer already emits bf16 x (halves the dominant HBM
    # read); accumulation stays f32, so only bf16 rounding error remains.
    x_bf16 = ts_batch2.astype(jnp.bfloat16)
    out4 = jax.block_until_ready(discriminator_forward(x_bf16, params))
    ref4 = _reference_forward(x_bf16.astype(jnp.float32), params)
    assert out4.shape == (batch2, 1)
    assert jnp.allclose(out4, ref4, atol=3e-2, rtol=3e-2), "Pallas bf16 mismatch"

    print("KERNEL_OK")
</pallas_src>

<mosaic_0001>
module attributes {stable_mosaic.version = 11 : i64} {
  func.func @kernel(%arg0: i32, %arg1: memref<128x32xf32, #tpu.memory_space<vmem>>, %arg2: memref<10x32xf32, #tpu.memory_space<vmem>>, %arg3: memref<10x1xf32, #tpu.memory_space<vmem>>, %arg4: memref<10x10xf32, #tpu.memory_space<vmem>>, %arg5: memref<10x1xf32, #tpu.memory_space<vmem>>, %arg6: memref<1x10xf32, #tpu.memory_space<vmem>>, %arg7: memref<1x1xf32, #tpu.memory_space<vmem>>, %arg8: memref<1x128xf32, #tpu.memory_space<vmem>>) attributes {dimension_semantics = [#tpu.dimension_semantics<parallel>], iteration_bounds = array<i64: 1>, scalar_prefetch = 0 : i64, scratch_operands = 0 : i64, tpu.core_type = #tpu.core_type<tc>, window_params = [{transform_indices = @transform_0, window_bounds = array<i64: 128, 32>}, {pipeline_mode = #tpu.pipeline_mode<synchronous>, transform_indices = @transform_1, window_bounds = array<i64: 10, 32>}, {pipeline_mode = #tpu.pipeline_mode<synchronous>, transform_indices = @transform_2, window_bounds = array<i64: 10, 1>}, {pipeline_mode = #tpu.pipeline_mode<synchronous>, transform_indices = @transform_3, window_bounds = array<i64: 10, 10>}, {pipeline_mode = #tpu.pipeline_mode<synchronous>, transform_indices = @transform_4, window_bounds = array<i64: 10, 1>}, {pipeline_mode = #tpu.pipeline_mode<synchronous>, transform_indices = @transform_5, window_bounds = array<i64: 1, 10>}, {pipeline_mode = #tpu.pipeline_mode<synchronous>, transform_indices = @transform_6, window_bounds = array<i64: 1, 1>}, {transform_indices = @transform_7, window_bounds = array<i64: 1, 128>}]} {
    %c0 = arith.constant 0 : index
    %c0_0 = arith.constant 0 : index
    %0 = vector.load %arg1[%c0, %c0_0] : memref<128x32xf32, #tpu.memory_space<vmem>>, vector<128x32xf32>
    %c0_1 = arith.constant 0 : index
    %c0_2 = arith.constant 0 : index
    %1 = vector.load %arg2[%c0_1, %c0_2] : memref<10x32xf32, #tpu.memory_space<vmem>>, vector<10x32xf32>
    %cst = arith.constant dense<0.000000e+00> : vector<10x128xf32>
    %2 = tpu.matmul %1, %0, %cst {dimension_numbers = #tpu.dot_dimension_numbers<[1], [1], [0], [0], [0, 0, 1, 0], [], []>} : vector<10x32xf32>, vector<128x32xf32>, vector<10x128xf32> -> vector<10x128xf32>
    %c0_3 = arith.constant 0 : index
    %c0_4 = arith.constant 0 : index
    %3 = vector.load %arg3[%c0_3, %c0_4] : memref<10x1xf32, #tpu.memory_space<vmem>>, vector<10x1xf32>
    %4 = vector.broadcast %3 : vector<10x1xf32> to vector<10x128xf32>
    %5 = arith.addf %2, %4 : vector<10x128xf32>
    %6 = math.tanh %5 : vector<10x128xf32>
    %c0_5 = arith.constant 0 : index
    %c0_6 = arith.constant 0 : index
    %7 = vector.load %arg4[%c0_5, %c0_6] : memref<10x10xf32, #tpu.memory_space<vmem>>, vector<10x10xf32>
    %cst_7 = arith.constant dense<0.000000e+00> : vector<10x128xf32>
    %8 = tpu.matmul %7, %6, %cst_7 {dimension_numbers = #tpu.dot_dimension_numbers<[1], [0], [0], [1], [0, 0, 1, 1], [], []>} : vector<10x10xf32>, vector<10x128xf32>, vector<10x128xf32> -> vector<10x128xf32>
    %c0_8 = arith.constant 0 : index
    %c0_9 = arith.constant 0 : index
    %9 = vector.load %arg5[%c0_8, %c0_9] : memref<10x1xf32, #tpu.memory_space<vmem>>, vector<10x1xf32>
    %10 = vector.broadcast %9 : vector<10x1xf32> to vector<10x128xf32>
    %11 = arith.addf %8, %10 : vector<10x128xf32>
    %12 = math.tanh %11 : vector<10x128xf32>
    %c0_10 = arith.constant 0 : index
    %c0_11 = arith.constant 0 : index
    %13 = vector.load %arg6[%c0_10, %c0_11] : memref<1x10xf32, #tpu.memory_space<vmem>>, vector<1x10xf32>
    %cst_12 = arith.constant dense<0.000000e+00> : vector<1x128xf32>
    %14 = tpu.matmul %13, %12, %cst_12 {dimension_numbers = #tpu.dot_dimension_numbers<[1], [0], [0], [1], [0, 0, 1, 1], [], []>} : vector<1x10xf32>, vector<10x128xf32>, vector<1x128xf32> -> vector<1x128xf32>
    %c0_13 = arith.constant 0 : index
    %c0_14 = arith.constant 0 : index
    %15 = vector.load %arg7[%c0_13, %c0_14] : memref<1x1xf32, #tpu.memory_space<vmem>>, vector<1x1xf32>
    %16 = vector.broadcast %15 : vector<1x1xf32> to vector<1x128xf32>
    %17 = arith.addf %14, %16 : vector<1x128xf32>
    %18 = arith.negf %17 : vector<1x128xf32>
    %19 = math.exp %18 : vector<1x128xf32>
    %cst_15 = arith.constant 1.000000e+00 : f32
    %20 = vector.broadcast %cst_15 : f32 to vector<1x128xf32>
    %21 = arith.addf %20, %19 : vector<1x128xf32>
    %22 = arith.divf %20, %21 : vector<1x128xf32>
    %c0_16 = arith.constant 0 : index
    %c0_17 = arith.constant 0 : index
    %23 = vector.load %arg8[%c0_16, %c0_17] : memref<1x128xf32, #tpu.memory_space<vmem>>, vector<1x128xf32>
    tpu.vector_store %arg8[%c0_16, %c0_17], %22 {strides = array<i32>} : memref<1x128xf32, #tpu.memory_space<vmem>>, vector<1x128xf32>,
    return
  }
  func.func @transform_0(%arg0: i32) -> (i32, i32) {
    %c0_i32 = arith.constant 0 : i32
    %c0_i32_0 = arith.constant 0 : i32
    return %arg0, %c0_i32 : i32, i32
  }
  func.func @transform_1(%arg0: i32) -> (i32, i32) {
    %c0_i32 = arith.constant 0 : i32
    %c0_i32_0 = arith.constant 0 : i32
    %c0_i32_1 = arith.constant 0 : i32
    return %c0_i32, %c0_i32_0 : i32, i32
  }
  func.func @transform_2(%arg0: i32) -> (i32, i32) {
    %c0_i32 = arith.constant 0 : i32
    %c0_i32_0 = arith.constant 0 : i32
    %c0_i32_1 = arith.constant 0 : i32
    return %c0_i32, %c0_i32_0 : i32, i32
  }
  func.func @transform_3(%arg0: i32) -> (i32, i32) {
    %c0_i32 = arith.constant 0 : i32
    %c0_i32_0 = arith.constant 0 : i32
    %c0_i32_1 = arith.constant 0 : i32
    return %c0_i32, %c0_i32_0 : i32, i32
  }
  func.func @transform_4(%arg0: i32) -> (i32, i32) {
    %c0_i32 = arith.constant 0 : i32
    %c0_i32_0 = arith.constant 0 : i32
    %c0_i32_1 = arith.constant 0 : i32
    return %c0_i32, %c0_i32_0 : i32, i32
  }
  func.func @transform_5(%arg0: i32) -> (i32, i32) {
    %c0_i32 = arith.constant 0 : i32
    %c0_i32_0 = arith.constant 0 : i32
    %c0_i32_1 = arith.constant 0 : i32
    return %c0_i32, %c0_i32_0 : i32, i32
  }
  func.func @transform_6(%arg0: i32) -> (i32, i32) {
    %c0_i32 = arith.constant 0 : i32
    %c0_i32_0 = arith.constant 0 : i32
    %c0_i32_1 = arith.constant 0 : i32
    return %c0_i32, %c0_i32_0 : i32, i32
  }
  func.func @transform_7(%arg0: i32) -> (i32, i32) {
    %c0_i32 = arith.constant 0 : i32
    %c0_i32_0 = arith.constant 0 : i32
    return %c0_i32, %arg0 : i32, i32
  }
}

</mosaic_0001>

<bundles_post_ra>
// kernel: tpu_custom_call.1
= control target key start
LH: loop header
LB: loop body
LE: loop exit
PB: predicated region body
PF: predicated region fallthrough
CT: control target
= control target key end

     0   :  { %s508_s0 = inlined_call_operand.hbm [shape: f32[8,32], index: 0, kind: input, shape index: {}]   ;;  %s509_s1 = inlined_call_operand.vmem [shape: f32[10,32], index: 1, kind: input, shape index: {}]   ;;  %s510_s2 = inlined_call_operand.vmem [shape: f32[10,1], index: 2, kind: input, shape index: {}]   ;;  %s511_s3 = inlined_call_operand.vmem [shape: f32[10,10], index: 3, kind: input, shape index: {}]   ;;  %s512_s4 = inlined_call_operand.vmem [shape: f32[10,1], index: 4, kind: input, shape index: {}]   ;;  %s513_s5 = inlined_call_operand.vmem [shape: f32[1,10], index: 5, kind: input, shape index: {}]   ;;  %s514_s6 = inlined_call_operand.<no memory space> [shape: f32[1,1], index: 6, kind: input, shape index: {}]   ;;  %s515_s7 = inlined_call_operand.hbm [shape: f32[1,8], index: 7, kind: output, shape index: {}]  }
   0x1   :  { %v12_v0 = vstv %s514_s6 }
   0x2   :  { %13 = vst [vmem:[#allocation2] sm:$0x1] %v12_v0 }
   0x3   :  { %14 = vsyncpa [#allocation4], 0 }
   0x4   :  { %15 = vsyncpa [#allocation5], 0 }
   0x5   :  { %19 = vsyncadd [#allocation4], 1920  ;;  %s20_s28 = sshll.u32 %s508_s0, 4  ;;  %s388_s29 = smov [#allocation3]   ;;  %s21_s28 = int_to_ptr.hbm [resolvable:$true] %s20_s28 }
   0x6   :  { %s22_s30 = sshll.u32 %s388_s29, 4  ;;  %s389_s8 = smov 128   ;;  %s23_s30 = int_to_ptr.vmem [resolvable:$true] %s22_s30 }
   0x7   :  { %s390_s9 = smov 8  }
   0x8   :  { %28 = dma.hbm_to_vmem [thread:$0]  %s21_s28, 128, %s23_s30, [#allocation4], %s389_s8, %s389_s8, %s390_s9  }
   0x9   :  { %384 = dma.done.wait [#allocation4], 2048  }
   0xa   :  { %385 = vsyncadd [#allocation4], 4294965248  ;;  %vm75_vm0 = vcmask 261120   ;;  %v60_v1 = vld [vmem:[#allocation3 + $0x78] sm:$0xff]  ;;  %v59_v2 = vld [vmem:[#allocation3 + $0x70] sm:$0xff]  ;;  %v391_v12 = vmov 0  }
   0xb   :  { %276 = vmatpush.xpose.msk.msra.mxu0 %vm75_vm0, %v60_v1  ;;  %300 = vmatpush.xpose.msk.msra.mxu3 %vm75_vm0, %v60_v1  ;;  %v58_v3 = vld [vmem:[#allocation3 + $0x68] sm:$0xff]  ;;  %v57_v4 = vld [vmem:[#allocation3 + $0x60] sm:$0xff]  ;;  %v56_v5 = vld [vmem:[#allocation3 + $0x58] sm:$0xff]  ;;  %vm176_vm1 = vcmask 1041408   ;;  %vm169_vm2 = vcmask 80896   ;;  %s266_s25 = sshll.u32 %s515_s7, 4  ;;  %s267_s25 = int_to_ptr.hbm [resolvable:$true] %s266_s25 }
   0xc   :  { %v55_v6 = vld [vmem:[#allocation3 + $0x50] sm:$0xff]  ;;  %v54_v7 = vld [vmem:[#allocation3 + $0x48] sm:$0xff]  ;;  %v53_v8 = vld [vmem:[#allocation3 + $0x40] sm:$0xff]  ;;  %321 = vset.pattern.permute.xlu0 %v391_v12  ;;  %322 = vset.pattern.permute.xlu1 %v391_v12 }
   0xd   :  { %v52_v9 = vld [vmem:[#allocation3 + $0x38] sm:$0xff]  ;;  %v64_v10 = vld [vmem:[%s510_s2 + $0x8] sm:$0x3]  ;;  %v51_v11 = vld [vmem:[#allocation3 + $0x30] sm:$0xff]  ;;  %323 = vset.pattern.permute.xlu2 %v391_v12 }
   0xe   :  { %72 = vperm.xlu0 %321, %v64_v10   ;;  %v50_v13 = vld [vmem:[#allocation3 + $0x28] sm:$0xff]  ;;  %v63_v14 = vld [vmem:[%s510_s2] sm:$0xff]  ;;  %v47_v17 = vld [vmem:[#allocation3 + $0x10] sm:$0xff] }
   0xf   :  { %277 = vmatpush.xpose.msk.msra.mxu0 %vm75_vm0, %v59_v2  ;;  %301 = vmatpush.xpose.msk.msra.mxu3 %vm75_vm0, %v59_v2  ;;  %v49_v15 = vld [vmem:[#allocation3 + $0x20] sm:$0xff]  ;;  %v48_v16 = vld [vmem:[#allocation3 + $0x18] sm:$0xff]  ;;  %v46_v18 = vld [vmem:[#allocation3 + $0x8] sm:$0xff] }
  0x10   :  { %v45_v19 = vld [vmem:[#allocation3] sm:$0xff]  ;;  %v206_v34 = vld [vmem:[#allocation2] sm:$0x1] }
  0x11   :  { %v61_v20 = vld [vmem:[%s509_s1] sm:$0xff]  ;;  %v62_v21 = vld [vmem:[%s509_s1 + $0x8] sm:$0x3]  ;;  %209 = vperm.xlu2 %323, %v206_v34  }
  0x12   :  { %v158_v22 = vld [vmem:[%s512_s4 + $0x8] sm:$0x3]  ;;  %v157_v24 = vld [vmem:[%s512_s4] sm:$0xff] }
  0x13   :  { %278 = vmatpush.xpose.msk.msra.mxu0 %vm75_vm0, %v58_v3  ;;  %302 = vmatpush.xpose.msk.msra.mxu3 %vm75_vm0, %v58_v3  ;;  %v155_v31 = vld [vmem:[%s511_s3] sm:$0xff]  ;;  %v156_v33 = vld [vmem:[%s511_s3 + $0x8] sm:$0x3]  ;;  %s392_s3 = smov [#allocation6]  }
  0x14   :  { %166 = vperm.xlu1 %322, %v158_v22   ;;  %v205_v42 = vld [vmem:[%s513_s5] sm:$0x1]  ;;  %s264_s5 = sshll.u32 %s392_s3, 4  ;;  %s265_s5 = int_to_ptr.vmem [resolvable:$true] %s264_s5 }
  0x16   :  { %67 = vperm.xlu0 %321, %v63_v14  }
  0x17   :  { %279 = vmatpush.xpose.msk.msra.mxu0 %vm75_vm0, %v57_v4  ;;  %303 = vmatpush.xpose.msk.msra.mxu3 %vm75_vm0, %v57_v4 }
  0x1b   :  { %280 = vmatpush.xpose.msk.msra.mxu0 %vm75_vm0, %v56_v5  ;;  %304 = vmatpush.xpose.msk.msra.mxu3 %vm75_vm0, %v56_v5 }
  0x1c   :  { %161 = vperm.xlu1 %322, %v157_v24  }
  0x1f   :  { %281 = vmatpush.xpose.msk.msra.mxu0 %vm75_vm0, %v55_v6  ;;  %305 = vmatpush.xpose.msk.msra.mxu3 %vm75_vm0, %v55_v6 }
  0x23   :  { %282 = vmatpush.xpose.msk.msra.mxu0 %vm75_vm0, %v54_v7  ;;  %306 = vmatpush.xpose.msk.msra.mxu3 %vm75_vm0, %v54_v7 }
  0x27   :  { %283 = vmatpush.xpose.msk.msra.mxu0 %vm75_vm0, %v53_v8  ;;  %307 = vmatpush.xpose.msk.msra.mxu3 %vm75_vm0, %v53_v8 }
  0x2b   :  { %284 = vmatpush.xpose.msk.msra.mxu0 %vm75_vm0, %v52_v9  ;;  %308 = vmatpush.xpose.msk.msra.mxu3 %vm75_vm0, %v52_v9 }
  0x2f   :  { %285 = vmatpush.xpose.msk.msra.mxu0 %vm75_vm0, %v51_v11  ;;  %309 = vmatpush.xpose.msk.msra.mxu3 %vm75_vm0, %v51_v11 }
  0x33   :  { %286 = vmatpush.xpose.msk.msra.mxu0 %vm75_vm0, %v50_v13  ;;  %310 = vmatpush.xpose.msk.msra.mxu3 %vm75_vm0, %v50_v13 }
  0x37   :  { %287 = vmatpush.xpose.msk.msra.mxu0 %vm75_vm0, %v49_v15  ;;  %311 = vmatpush.xpose.msk.msra.mxu3 %vm75_vm0, %v49_v15 }
  0x3b   :  { %288 = vmatpush.xpose.msk.msra.mxu0 %vm75_vm0, %v48_v16  ;;  %312 = vmatpush.xpose.msk.msra.mxu3 %vm75_vm0, %v48_v16 }
  0x3f   :  { %289 = vmatpush.xpose.msk.msra.mxu0 %vm75_vm0, %v47_v17  ;;  %313 = vmatpush.xpose.msk.msra.mxu3 %vm75_vm0, %v47_v17 }
  0x43   :  { %290 = vmatpush.xpose.msk.msra.mxu0 %vm75_vm0, %v46_v18  ;;  %314 = vmatpush.xpose.msk.msra.mxu3 %vm75_vm0, %v46_v18 }
  0x47   :  { %291 = vmatpush.xpose.msk.msra.mxu0 %vm75_vm0, %v45_v19  ;;  %315 = vmatpush.xpose.msk.msra.mxu3 %vm75_vm0, %v45_v19 }
  0x4a   :  { %292 = vmatmul.msk.f32.vlgmr.msra.gmra.mxu0 %vm75_vm0, %v61_v20  ;;  %293 = vmatmul.msk.f32.vlgmr.msra.gmra.mxu3 %vm75_vm0, %v62_v21 }
  0x6b   :  { %v210_v44 = vpop.permute.xlu2 %209 }
  0x6c   :  { %v212_v45 = vperm.slane %v210_v44, 0 }
  0x80   :  { %v73_v23 = vpop.permute.xlu0 %72 }
  0x86   :  { %v167_v35 = vpop.permute.xlu1 %166 }
  0x88   :  { %v68_v25 = vpop.permute.xlu0 %67 }
  0x8e   :  { %v162_v37 = vpop.permute.xlu1 %161 }
  0xc7   :  { %v147_v26 = vpop.f32.mrf.mxu0 }
  0xc8   :  { %v148_v28 = vadd.f32 %v147_v26, %v68_v25 }
  0xcd   :  { %v150_v27 = vpop.f32.mrf.mxu3 }
  0xce   :  { %v151_v29 = vadd.f32 %v150_v27, %v73_v23 }
  0xd0   :  { %324 = vtanh.f32 %v151_v29 }
  0xd1   :  { %326 = vtanh.f32 %v148_v28 }
  0xd6   :  { %v325_v30 = vpop.eup %324 }
  0xd7   :  { %294 = vmatpush.msk.msra.mxu1 %vm176_vm1, %v325_v30  ;;  %v327_v32 = vpop.eup %326 }
  0xd9   :  { %195 = vmatpush.msra.mxu1 %v327_v32 }
  0xda   :  { %295 = vmatmul.msk.f32.vlgmr.msra.gmra.mxu1 %vm169_vm2, %v155_v31 }
  0xe2   :  { %296 = vmatmul.msk.f32.gmra.mxu1 %vm169_vm2, %v156_v33 }
 0x157   :  { %v197_v36 = vpop.f32.mrf.mxu1 }
 0x158   :  { %v198_v39 = vadd.f32 %v197_v36, %v162_v37 }
 0x15f   :  { %v200_v38 = vpop.f32.mrf.mxu1 }
 0x160   :  { %v201_v40 = vadd.f32 %v200_v38, %v167_v35 }
 0x162   :  { %328 = vtanh.f32 %v201_v40 }
 0x163   :  { %330 = vtanh.f32 %v198_v39 }
 0x168   :  { %v329_v41 = vpop.eup %328 }
 0x169   :  { %297 = vmatpush.msk.msra.mxu2 %vm176_vm1, %v329_v41  ;;  %v331_v43 = vpop.eup %330 }
 0x16b   :  { %234 = vmatpush.msra.mxu2 %v331_v43 }
 0x16c   :  { %298 = vmatmul.msk.f32.vlgmr.msra.gmra.mxu2 %vm169_vm2, %v205_v42 }
 0x1ef   :  { %v236_v46 = vpop.f32.mrf.mxu2 }
 0x1f0   :  { %v237_v47 = vadd.f32 %v236_v46, %v212_v45 }
 0x1f2   :  { %v299_v48 = vmul.f32 -1.442695, %v237_v47 }
 0x1f4   :  { %332 = vpow2.f32 %v299_v48 }
 0x1fa   :  { %v333_v49 = vpop.eup %332 }
 0x1fb   :  { %v242_v50 = vadd.f32 1.0, %v333_v49 }
 0x1fd   :  { %334 = vrcp.f32 %v242_v50  ;;  %v254_v54 = vand.u32 2147483648, %v242_v50  ;;  %v252_v56 = vand.u32 2147483647, %v242_v50  ;;  %vm248_vm4 = vweird.f32 %v242_v50 }
 0x1ff   :  { %v255_v58 = vor.u32 1.1754944e-38, %v254_v54  ;;  %vm253_vm6 = vcmp.eq.f32.partialorder %v252_v56, 8.507059e+37 }
 0x203   :  { %v335_v51 = vpop.eup %334 }
 0x204   :  { %v244_v52 = vmul.f32 %v335_v51, %v242_v50  ;;  %vm249_vm3 = vweird.f32 %v335_v51 }
 0x205   :  { %vm250_vm5 = vmor %vm248_vm4, %vm249_vm3 }
 0x206   :  { %v245_v53 = vsub.f32 1.0, %v244_v52 }
 0x208   :  { %v246_v55 = vmul.f32 %v335_v51, %v245_v53 }
 0x20a   :  { %v247_v57 = vadd.f32 %v335_v51, %v246_v55 }
 0x20c   :  { %v251_v59 = vsel %vm250_vm5, %v335_v51, %v247_v57 }
 0x20d   :  { %v256_v60 = vsel %vm253_vm6, %v255_v58, %v251_v59 }
 0x20e   :  { %258 = vst [vmem:[#allocation6] sm:$0x1] %v256_v60 }
 0x20f   :  { %269 = dma.vmem_to_hbm [thread:$0]  %s265_s5, 16, %s267_s25, [#allocation5]  }
 0x210   :  { %386 = dma.done.wait [#allocation5], 16  }
 0x211   :  { %387 = vsyncadd [#allocation5], 4294967280 }
 0x212   :  { %274 = vsyncpa [#allocation4], 1 }
 0x213   :  { %275 = vsyncpa [#allocation5], 1 }

</bundles_post_ra>
